<compile_context>
chip_gen: v6e
topology: v6e:2x2x1
jax: 0.10.0
libtpu: 0.0.40
codegen_flags: <defaults>
</compile_context>

<pallas_src>
import functools

import jax
import jax.numpy as jnp
from jax import lax
from jax.experimental import pallas as pl
from jax.experimental.pallas import tpu as pltpu


def _round_up(x, m):
    return (x + m - 1) // m * m


def _choose_tile(n):
    """Destination-row tile: single tile for small graphs, 256 rows otherwise."""
    if n <= 512:
        return _round_up(n, 32)
    return 256


# ---------------------------------------------------------------------------
# Kernel 1: linear projection + batched per-head attention logits.
# ---------------------------------------------------------------------------
def _project_kernel(x_ref, w_ref, al_ref, ar_ref, feat_ref, er_ref, elt_ref):
    x = x_ref[...]                                            # (T, Fin)  bf16
    w = w_ref[...]                                            # (Fin, HD) bf16
    feat = jnp.dot(x, w, preferred_element_type=jnp.float32)  # (T, HD) f32 accum
    # er[t, h] = <feat[t], attn_r[h]>  — ONE matmul for all heads (block-diag pack).
    er = jnp.dot(feat, ar_ref[...], preferred_element_type=jnp.float32)   # (T, H)
    # elt[h, t] = <feat[t], attn_l[h]> — produced transposed so the attention
    # kernel broadcasts it along the src (lane) axis for free.
    elt = lax.dot_general(al_ref[...], feat, (((0,), (1,)), ((), ())),
                          preferred_element_type=jnp.float32)             # (H, T)
    feat_ref[...] = feat.astype(feat_ref.dtype)   # bf16 for the aggregation matmul
    er_ref[...] = er
    elt_ref[...] = elt


# ---------------------------------------------------------------------------
# Kernel 2: masked edge softmax + alpha-weighted aggregation (+bias, +ELU).
# ---------------------------------------------------------------------------
def _attn_agg_kernel(adj_ref, er_ref, elt_ref, feat_ref, b_ref, out_ref, *,
                     num_heads, out_dim, negative_slope, apply_elu):
    # Head-invariant additive mask: 0 where edge exists, -1e30 otherwise (hoisted).
    addmask = jnp.where(adj_ref[...] != 0, 0.0, -1e30).astype(jnp.float32)  # (T, N)
    feat = feat_ref[...]                                    # (N, HD) bf16, all sources
    ns = jnp.float32(negative_slope)
    outs = []
    for h in range(num_heads):                              # few heads -> static unroll
        score = er_ref[:, h:h + 1] + elt_ref[h:h + 1, :]    # (T,1)+(1,N) -> (T, N)
        score = jnp.maximum(score, ns * score)              # LeakyReLU (0 < slope < 1)
        score = score + addmask
        m = jnp.max(score, axis=1, keepdims=True)           # (T, 1)
        p = jnp.exp(score - m)                              # masked entries underflow to 0
        s = jnp.sum(p, axis=1, keepdims=True)
        inv_s = pl.reciprocal(jnp.maximum(s, jnp.float32(1e-20)), approx=True)
        agg = jnp.dot(p.astype(jnp.bfloat16),
                      feat[:, h * out_dim:(h + 1) * out_dim],
                      preferred_element_type=jnp.float32)   # (T, D)
        outs.append(agg * inv_s)                            # fold 1/s after the matmul
    out = jnp.concatenate(outs, axis=1) + b_ref[...]        # (T, H*D) lane-dense
    if apply_elu:
        out = jnp.where(out > 0, out, jnp.exp(out) - 1.0)   # ELU
    out_ref[...] = out.astype(out_ref.dtype)                # single full-width store


# ---------------------------------------------------------------------------
# JAX glue
# ---------------------------------------------------------------------------
def gat_conv(x, adj_i8, params, *, negative_slope, apply_elu, tile):
    """One GATConv layer on padded inputs.

    x: (Npad, Fin) f32, adj_i8: (Npad, Npad) int8 (adj[dst, src]).
    Returns (Npad, H, D) f32.
    """
    w, attn_l, attn_r, bias = params
    npad, fin = x.shape
    nh, d = attn_l.shape
    hd = nh * d
    grid = (npad // tile,)

    # Block-diagonal packing of attn_l / attn_r -> (HD, H): per-head logits
    # become a single feat @ pack matmul instead of 2*H tiny M=1 dots.
    eye = jnp.eye(nh, dtype=jnp.float32)
    al_pack = (attn_l[:, :, None] * eye[:, None, :]).reshape(hd, nh)
    ar_pack = (attn_r[:, :, None] * eye[:, None, :]).reshape(hd, nh)

    cp = pltpu.CompilerParams(dimension_semantics=("parallel",),
                              vmem_limit_bytes=48 * 1024 * 1024)

    feat, er, elt = pl.pallas_call(
        _project_kernel,
        out_shape=(jax.ShapeDtypeStruct((npad, hd), jnp.bfloat16),
                   jax.ShapeDtypeStruct((npad, nh), jnp.float32),
                   jax.ShapeDtypeStruct((nh, npad), jnp.float32)),
        grid_spec=pltpu.PrefetchScalarGridSpec(
            num_scalar_prefetch=0, grid=grid,
            in_specs=[pl.BlockSpec((tile, fin), lambda i: (i, 0)),   # x (bf16)
                      pl.BlockSpec((fin, hd), lambda i: (0, 0)),     # W (bf16)
                      pl.BlockSpec((hd, nh), lambda i: (0, 0)),      # attn_l pack
                      pl.BlockSpec((hd, nh), lambda i: (0, 0))],     # attn_r pack
            out_specs=[pl.BlockSpec((tile, hd), lambda i: (i, 0)),   # feat (bf16)
                       pl.BlockSpec((tile, nh), lambda i: (i, 0)),   # er
                       pl.BlockSpec((nh, tile), lambda i: (0, i))]), # el (transposed)
        compiler_params=cp,
    )(x.astype(jnp.bfloat16), w.astype(jnp.bfloat16), al_pack, ar_pack)

    kernel = functools.partial(_attn_agg_kernel, num_heads=nh, out_dim=d,
                               negative_slope=negative_slope, apply_elu=apply_elu)
    out = pl.pallas_call(
        kernel,
        out_shape=jax.ShapeDtypeStruct((npad, hd), jnp.float32),
        grid_spec=pltpu.PrefetchScalarGridSpec(
            num_scalar_prefetch=0, grid=grid,
            in_specs=[pl.BlockSpec((tile, npad), lambda i: (i, 0)),  # adj (int8)
                      pl.BlockSpec((tile, nh), lambda i: (i, 0)),    # er (dst tile)
                      pl.BlockSpec((nh, npad), lambda i: (0, 0)),    # el (all src)
                      pl.BlockSpec((npad, hd), lambda i: (0, 0)),    # feat (all src)
                      pl.BlockSpec((1, hd), lambda i: (0, 0))],      # bias
            out_specs=pl.BlockSpec((tile, hd), lambda i: (i, 0))),
        compiler_params=cp,
    )(adj_i8, er, elt, feat, bias)
    return out.reshape(npad, nh, d)


def gat_forward(x, adj, layer_params, *, num_layers, negative_slope):
    """Mirrors GAT.forward: hidden GATConv layers (ELU) + output layer, mean over heads."""
    n = x.shape[0]
    tile = _choose_tile(n)
    npad = _round_up(n, tile)
    xp = jnp.pad(x, ((0, npad - n), (0, 0)))
    adj_i8 = jnp.pad((adj != 0).astype(jnp.int8),
                     ((0, npad - n), (0, npad - n)))

    h = xp
    for l in range(num_layers):
        temp = h.reshape(npad, -1)                       # h.flatten(1)
        h = gat_conv(temp, adj_i8, layer_params[l],
                     negative_slope=negative_slope, apply_elu=True, tile=tile)
    heads = [h[:n, i] for i in range(h.shape[1])]
    logits = gat_conv(h.reshape(npad, -1), adj_i8, layer_params[-1],
                      negative_slope=negative_slope, apply_elu=False,
                      tile=tile).mean(axis=1)[:n]
    return heads, logits


def init_gat_params(key, num_layers, in_dim, num_hidden, heads, num_classes):
    """Deterministic synthetic parameters matching GATConv shapes."""
    dims_in = ([in_dim]
               + [num_hidden * heads[l - 1] for l in range(1, num_layers)]
               + [num_hidden * heads[-2]])
    dims_out = [num_hidden] * num_layers + [num_classes]
    params = []
    for l in range(num_layers + 1):
        key, k1, k2, k3 = jax.random.split(key, 4)
        fin, fout, nh = dims_in[l], dims_out[l], heads[l]
        scale = 1.0 / jnp.sqrt(jnp.float32(fin))
        w = jax.random.normal(k1, (fin, nh * fout), jnp.float32) * scale
        attn_l = jax.random.normal(k2, (nh, fout), jnp.float32) * 0.1
        attn_r = jax.random.normal(k3, (nh, fout), jnp.float32) * 0.1
        bias = jnp.zeros((1, nh * fout), jnp.float32)    # DGL inits bias to zeros
        params.append((w, attn_l, attn_r, bias))
    return params


if __name__ == "__main__":
    # small, forward-consistent configuration
    N = 32              # number of graph nodes
    in_dim = 16
    num_hidden = 8
    num_layers = 2
    heads = [2, 2, 2]   # num_layers hidden layers + 1 output layer
    num_classes = 4
    negative_slope = 0.2
    # feat_drop = attn_drop = 0.0 (eval mode -> identity); residual = False

    key = jax.random.PRNGKey(0)
    ka, kx, kp = jax.random.split(key, 3)

    # dense adjacency adj[dst, src]; add self-loops so every node has in-degree >= 1
    adj = (jax.random.uniform(ka, (N, N)) < 0.3).astype(jnp.float32)
    adj = jnp.maximum(adj, jnp.eye(N, dtype=jnp.float32))

    x = jax.random.normal(kx, (N, in_dim), jnp.float32)
    params = init_gat_params(kp, num_layers, in_dim, num_hidden, heads, num_classes)

    heads_out, logits = gat_forward(x, adj, params,
                                    num_layers=num_layers,
                                    negative_slope=negative_slope)

    for t in heads_out:
        jax.block_until_ready(t)
    jax.block_until_ready(logits)

    assert logits.shape == (N, num_classes)
    assert len(heads_out) == heads[num_layers - 1]
    assert heads_out[0].shape == (N, num_hidden)
    assert bool(jnp.all(jnp.isfinite(logits)))

    print("KERNEL_OK")
</pallas_src>

<mosaic_0001>
module attributes {stable_mosaic.version = 11 : i64} {
  func.func @_project_kernel(%arg0: i32, %arg1: memref<32x16xbf16, #tpu.memory_space<vmem>>, %arg2: memref<16x16xbf16, #tpu.memory_space<vmem>>, %arg3: memref<16x2xf32, #tpu.memory_space<vmem>>, %arg4: memref<16x2xf32, #tpu.memory_space<vmem>>, %arg5: memref<32x16xbf16, #tpu.memory_space<vmem>>, %arg6: memref<32x2xf32, #tpu.memory_space<vmem>>, %arg7: memref<2x32xf32, #tpu.memory_space<vmem>>) attributes {dimension_semantics = [#tpu.dimension_semantics<parallel>], iteration_bounds = array<i64: 1>, scalar_prefetch = 0 : i64, scratch_operands = 0 : i64, tpu.core_type = #tpu.core_type<tc>, window_params = [{transform_indices = @transform_0, window_bounds = array<i64: 32, 16>}, {pipeline_mode = #tpu.pipeline_mode<synchronous>, transform_indices = @transform_1, window_bounds = array<i64: 16, 16>}, {pipeline_mode = #tpu.pipeline_mode<synchronous>, transform_indices = @transform_2, window_bounds = array<i64: 16, 2>}, {pipeline_mode = #tpu.pipeline_mode<synchronous>, transform_indices = @transform_3, window_bounds = array<i64: 16, 2>}, {transform_indices = @transform_4, window_bounds = array<i64: 32, 16>}, {transform_indices = @transform_5, window_bounds = array<i64: 32, 2>}, {transform_indices = @transform_6, window_bounds = array<i64: 2, 32>}]} {
    %c0 = arith.constant 0 : index
    %c0_0 = arith.constant 0 : index
    %0 = vector.load %arg1[%c0, %c0_0] : memref<32x16xbf16, #tpu.memory_space<vmem>>, vector<32x16xbf16>
    %c0_1 = arith.constant 0 : index
    %c0_2 = arith.constant 0 : index
    %1 = vector.load %arg2[%c0_1, %c0_2] : memref<16x16xbf16, #tpu.memory_space<vmem>>, vector<16x16xbf16>
    %cst = arith.constant dense<0.000000e+00> : vector<32x16xf32>
    %2 = tpu.matmul %0, %1, %cst {dimension_numbers = #tpu.dot_dimension_numbers<[1], [0], [0], [1], [0, 0, 1, 1], [], []>} : vector<32x16xbf16>, vector<16x16xbf16>, vector<32x16xf32> -> vector<32x16xf32>
    %c0_3 = arith.constant 0 : index
    %c0_4 = arith.constant 0 : index
    %3 = vector.load %arg4[%c0_3, %c0_4] : memref<16x2xf32, #tpu.memory_space<vmem>>, vector<16x2xf32>
    %cst_5 = arith.constant dense<0.000000e+00> : vector<32x2xf32>
    %4 = tpu.matmul %2, %3, %cst_5 {dimension_numbers = #tpu.dot_dimension_numbers<[1], [0], [0], [1], [0, 0, 1, 1], [], []>} : vector<32x16xf32>, vector<16x2xf32>, vector<32x2xf32> -> vector<32x2xf32>
    %c0_6 = arith.constant 0 : index
    %c0_7 = arith.constant 0 : index
    %5 = vector.load %arg3[%c0_6, %c0_7] : memref<16x2xf32, #tpu.memory_space<vmem>>, vector<16x2xf32>
    %cst_8 = arith.constant dense<0.000000e+00> : vector<2x32xf32>
    %6 = tpu.matmul %5, %2, %cst_8 {dimension_numbers = #tpu.dot_dimension_numbers<[0], [1], [1], [0], [0, 1, 1, 0], [], []>} : vector<16x2xf32>, vector<32x16xf32>, vector<2x32xf32> -> vector<2x32xf32>
    %7 = arith.truncf %2 : vector<32x16xf32> to vector<32x16xbf16>
    %c0_9 = arith.constant 0 : index
    %c0_10 = arith.constant 0 : index
    %8 = vector.load %arg5[%c0_9, %c0_10] : memref<32x16xbf16, #tpu.memory_space<vmem>>, vector<32x16xbf16>
    tpu.vector_store %arg5[%c0_9, %c0_10], %7 {strides = array<i32>} : memref<32x16xbf16, #tpu.memory_space<vmem>>, vector<32x16xbf16>,
    %c0_11 = arith.constant 0 : index
    %c0_12 = arith.constant 0 : index
    %9 = vector.load %arg6[%c0_11, %c0_12] : memref<32x2xf32, #tpu.memory_space<vmem>>, vector<32x2xf32>
    tpu.vector_store %arg6[%c0_11, %c0_12], %4 {strides = array<i32>} : memref<32x2xf32, #tpu.memory_space<vmem>>, vector<32x2xf32>,
    %c0_13 = arith.constant 0 : index
    %c0_14 = arith.constant 0 : index
    %10 = vector.load %arg7[%c0_13, %c0_14] : memref<2x32xf32, #tpu.memory_space<vmem>>, vector<2x32xf32>
    tpu.vector_store %arg7[%c0_13, %c0_14], %6 {strides = array<i32>} : memref<2x32xf32, #tpu.memory_space<vmem>>, vector<2x32xf32>,
    return
  }
  func.func @transform_0(%arg0: i32) -> (i32, i32) {
    %c0_i32 = arith.constant 0 : i32
    %c0_i32_0 = arith.constant 0 : i32
    return %arg0, %c0_i32 : i32, i32
  }
  func.func @transform_1(%arg0: i32) -> (i32, i32) {
    %c0_i32 = arith.constant 0 : i32
    %c0_i32_0 = arith.constant 0 : i32
    %c0_i32_1 = arith.constant 0 : i32
    return %c0_i32, %c0_i32_0 : i32, i32
  }
  func.func @transform_2(%arg0: i32) -> (i32, i32) {
    %c0_i32 = arith.constant 0 : i32
    %c0_i32_0 = arith.constant 0 : i32
    %c0_i32_1 = arith.constant 0 : i32
    return %c0_i32, %c0_i32_0 : i32, i32
  }
  func.func @transform_3(%arg0: i32) -> (i32, i32) {
    %c0_i32 = arith.constant 0 : i32
    %c0_i32_0 = arith.constant 0 : i32
    %c0_i32_1 = arith.constant 0 : i32
    return %c0_i32, %c0_i32_0 : i32, i32
  }
  func.func @transform_4(%arg0: i32) -> (i32, i32) {
    %c0_i32 = arith.constant 0 : i32
    %c0_i32_0 = arith.constant 0 : i32
    return %arg0, %c0_i32 : i32, i32
  }
  func.func @transform_5(%arg0: i32) -> (i32, i32) {
    %c0_i32 = arith.constant 0 : i32
    %c0_i32_0 = arith.constant 0 : i32
    return %arg0, %c0_i32 : i32, i32
  }
  func.func @transform_6(%arg0: i32) -> (i32, i32) {
    %c0_i32 = arith.constant 0 : i32
    %c0_i32_0 = arith.constant 0 : i32
    return %c0_i32, %arg0 : i32, i32
  }
}

</mosaic_0001>

<bundles_post_ra>
// kernel: tpu_custom_call.1
= control target key start
LH: loop header
LB: loop body
LE: loop exit
PB: predicated region body
PF: predicated region fallthrough
CT: control target
= control target key end

     0   :  { %vm44_vm0 = vcmask 130048   ;;  %s548_s0 = inlined_call_operand.vmem [shape: bf16[32,16], index: 0, kind: input, shape index: {}]   ;;  %s549_s1 = inlined_call_operand.vmem [shape: bf16[16,16], index: 1, kind: input, shape index: {}]   ;;  %s550_s2 = inlined_call_operand.vmem [shape: f32[16,2], index: 2, kind: input, shape index: {}]   ;;  %s551_s3 = inlined_call_operand.vmem [shape: f32[16,2], index: 3, kind: input, shape index: {}]   ;;  %s552_s4 = inlined_call_operand.vmem [shape: bf16[32,16], index: 4, kind: output, shape index: {0}]   ;;  %s553_s5 = inlined_call_operand.vmem [shape: f32[32,2], index: 5, kind: output, shape index: {1}]   ;;  %s554_s6 = inlined_call_operand.hbm [shape: f32[2,32], index: 6, kind: output, shape index: {2}]  }
   0x1   :  { %v422_v0 = vld [vmem:[%s549_s1] sm:$0xff]   ;;  %v424_v2 = vld [vmem:[%s548_s0 + $0x8] sm:$0xff]  }
   0x2   :  { %v423_v1 = vld [vmem:[%s548_s0] sm:$0xff]   ;;  %392 = vmatprep.subr.bf16.mxu1 %v422_v0 }
   0x3   :  { %393 = vmatpush3.bf16.msra.mxu1 %v422_v0  ;;  %394 = vmatprep.mubr.msk.bf16.mxu1 %vm44_vm0, %v423_v1  ;;  %v199_v3 = vld [vmem:[%s550_s2] sm:$0xff] }
   0x4   :  { %12 = vsyncpa [#allocation3], 0  ;;  %201 = vxpose.xlu0.b32.start [1/2] (short) (narrow) %v199_v3, 8  ;;  %v200_v4 = vld [vmem:[%s550_s2 + $0x8] sm:$0xff]  ;;  %v447_v6 = vmov 0.0   ;;  %v100_v7 = vld [vmem:[%s551_s3] sm:$0xff] }
   0x5   :  { %v101_v5 = vld [vmem:[%s551_s3 + $0x8] sm:$0xff]  ;;  %408 = vmatprep.subr.mxu0 %v447_v6  ;;  %vm448_vm1 = vmmov 0   ;;  %vm322_vm2 = vcmask 125952   ;;  %vm327_vm3 = vcmask 15360   ;;  %s449_s22 = smov [#allocation2]   ;;  %vm332_vm4 = vcmask 254976  }
   0x6   :  { %395 = vmatmul.mubr.msk.bf16.vlgmr.msra.gmra.mxu1 %vm44_vm0, %v424_v2  ;;  %398 = vmatprep.subr.mxu1 %v101_v5  ;;  %s344_s23 = sshll.u32 %s449_s22, 4  ;;  %s345_s23 = int_to_ptr.vmem [resolvable:$true] %s344_s23 }
   0x7   :  { %399 = vmatpush3.msra.mxu1 %v101_v5  ;;  %416 = vmatprep.mubr.msk.f32.mxu0 %vm448_vm1, %v447_v6  ;;  %s425_s24 = scalar_lea.vmem %s345_s23, 32  ;;  %p430_p1 = scmp.lt.s32.totalorder %s345_s23, %s345_s23 }
   0x8   :  { %202 = vxpose.xlu0.b32.end [2/2] (short) (narrow) %v200_v4, 8  ;;  %400 = vmatprep.subr.mxu1 %v100_v7  ;;  %p426_p0 = scmp.ne.s32.totalorder %s345_s23, %s425_s24  ;;  %p431_p2 = scmp.lt.s32.totalorder %s425_s24, %s425_s24 }
   0x9   :  { %401 = vmatpush3.msra.mxu1 %v100_v7 }
   0xa   :  { %p432_p3 = por %p431_p2, %p430_p1 }
   0xc   :  { %p433_p4 = pnand %p432_p3, %p426_p0 }
  0x80   :  { %v217_v16 = vpop.trf.xlu0 }
  0xc6   :  { %v396_v8 = vpop.f32.mrf.mxu1 }
  0xc7   :  { %v376_v9 = vpack.c.bf16 %v396_v8, %v396_v8 }
  0xc8   :  { %v85_v10 = vpop.f32.mrf.mxu1 }
  0xc9   :  { %325 = vst.msk [vmem:[%s552_s4 + $0x8] sm:$0xf] %vm322_vm2, %v376_v9  ;;  %v374_v11 = vpack.c.bf16 %v85_v10, %v85_v10  ;;  %402 = vmatprep.mubr.msk.f32.mxu1 %vm44_vm0, %v85_v10 }
  0xca   :  { %v397_v12 = vpop.f32.mrf.mxu1 }
  0xcb   :  { %323 = vst.msk [vmem:[%s552_s4] sm:$0xf] %vm322_vm2, %v374_v11  ;;  %v377_v13 = vpack.c.bf16 %v397_v12, %v397_v12  ;;  %409 = vmatpush3.xpose.msk.msra.mxu0 %vm44_vm0, %v397_v12 }
  0xcc   :  { %v88_v14 = vpop.f32.mrf.mxu1  ;;  %410 = vmatprep.subr.mxu0 %v447_v6 }
  0xcd   :  { %326 = vst.msk [vmem:[%s552_s4 + $0xc] sm:$0xf] %vm322_vm2, %v377_v13  ;;  %v375_v15 = vpack.c.bf16 %v88_v14, %v88_v14  ;;  %403 = vmatmul.mubr.msk.f32.vlgmr.msra.gmra.mxu1 %vm44_vm0, %v88_v14 }
  0xce   :  { %405 = vmatprep.mubr.msk.f32.mxu1 %vm44_vm0, %v396_v8 }
  0xcf   :  { %324 = vst.msk [vmem:[%s552_s4 + $0x4] sm:$0xf] %vm322_vm2, %v375_v15  ;;  %411 = vmatpush3.xpose.msk.msra.mxu0 %vm44_vm0, %v396_v8 }
  0xd0   :  { %412 = vmatprep.subr.mxu0 %v447_v6 }
  0xd1   :  { %406 = vmatmul.mubr.msk.f32.gmra.mxu1 %vm44_vm0, %v397_v12 }
  0xd3   :  { %413 = vmatpush3.xpose.msk.msra.mxu0 %vm44_vm0, %v88_v14 }
  0xd4   :  { %414 = vmatprep.subr.mxu0 %v447_v6 }
  0xd7   :  { %415 = vmatpush3.xpose.msk.msra.mxu0 %vm44_vm0, %v85_v10 }
  0xda   :  { %417 = vmatmul.mubr.msk.f32.vlgmr.msra.gmra.mxu0 %vm44_vm0, %v217_v16 }
 0x18d   :  { %v404_v17 = vpop.f32.mrf.mxu1 }
 0x18e   :  { %329 = vst.msk [vmem:[%s553_s5 + $0x8] sm:$0xff] %vm327_vm3, %v404_v17 }
 0x18f   :  { %v180_v18 = vpop.f32.mrf.mxu1 }
 0x190   :  { %328 = vst.msk [vmem:[%s553_s5] sm:$0xff] %vm327_vm3, %v180_v18 }
 0x191   :  { %v407_v19 = vpop.f32.mrf.mxu1 }
 0x192   :  { %331 = vst.msk [vmem:[%s553_s5 + $0x18] sm:$0xff] %vm327_vm3, %v407_v19 }
 0x193   :  { %v190_v20 = vpop.f32.mrf.mxu1 }
 0x194   :  { %330 = vst.msk [vmem:[%s553_s5 + $0x10] sm:$0xff] %vm327_vm3, %v190_v20 }
 0x19a   :  { %v302_v21 = vpop.f32.mrf.mxu0 }
 0x19b   :  { %333 = vst.msk [vmem:[#allocation2] sm:$0x3] %vm332_vm4, %v302_v21 }
 0x19c   :  { %v418_v22 = vpop.f32.mrf.mxu0 }
 0x19d   :  { %436 = shalt.err (!%p433_p4)
}
 0x19e   :  { %347 = dma.vmem_to_hbm [thread:$0]  %s345_s23, 32, %s554_s6, [#allocation3]  }
 0x19f   :  { %445 = dma.done.wait [#allocation3], 32  }
 0x1a0   :  { %446 = vsyncadd [#allocation3], 4294967264 }
 0x1a1   :  { %355 = vsyncpa [#allocation3], 1 }

</bundles_post_ra>
